<compile_context>
chip_gen: v7x
topology: tpu7x:2x2x1
jax: 0.10.0
libtpu: 0.0.40
codegen_flags: <defaults>
</compile_context>

<pallas_src>
import functools

import jax
import jax.numpy as jnp
from jax.experimental import pallas as pl
from jax.experimental.pallas import tpu as pltpu


def _cin1d_kernel(x_ref, g_ref, b_ref, o_ref, *, eps, length):
    # x_ref/o_ref: (ROWS, L)   g_ref/b_ref: (ROWS, 1)
    x = x_ref[...].astype(jnp.float32)          # no-op copy for f32 inputs

    # One-pass statistics (sum, sum of squares) per row.
    s1 = jnp.sum(x, axis=-1, keepdims=True)
    s2 = jnp.sum(x * x, axis=-1, keepdims=True)
    mean = s1 * (1.0 / length)
    # Unbiased variance (torch.var default): (sum(x^2) - L*mean^2) / (L - 1).
    var = (s2 - jnp.float32(length) * mean * mean) * (1.0 / (length - 1))
    var = jnp.maximum(var, 0.0)                 # guard one-pass cancellation
    inv_std = jax.lax.rsqrt(var + jnp.float32(eps))

    # Fold the affine into a single multiply-add streaming pass.
    scale = g_ref[...].astype(jnp.float32) * inv_std            # (ROWS, 1)
    shift = b_ref[...].astype(jnp.float32) - mean * scale       # (ROWS, 1)
    o_ref[...] = (x * scale + shift).astype(o_ref.dtype)


def _round_up(v, m):
    return ((v + m - 1) // m) * m


def _choose_rows_block(total_rows, length, itemsize, target_bytes):
    bytes_per_row = max(1, length * itemsize)
    rows = max(8, (target_bytes // bytes_per_row) // 8 * 8)
    # Keep >= ~4 grid steps when there are enough rows (hides prologue/epilogue
    # DMA and balances the two v7x TensorCores); tiny problems run in one step.
    if total_rows >= 32:
        rows = min(rows, _round_up(pl.cdiv(total_rows, 4), 8))
    if rows >= total_rows:
        rows = total_rows  # full-extent block: exempt from the multiple-of-8 rule
    return rows


def conditional_instance_norm_1d(x, c, gamma_table, beta_table, eps=1e-5):
    """x: (N, C, L) float, c: (N,) int32, gamma/beta_table: (in_dim, C)."""
    N, C, L = x.shape
    assert L >= 2, "unbiased variance (torch.var default) requires L >= 2"
    R = N * C

    # Collapse (N, C) -> rows; contiguous reshape, no data movement.
    x_rows = x.reshape(R, L)
    # Embedding gather (tiny XLA glue), presented as one value per row.
    gamma = jnp.take(gamma_table, c, axis=0).reshape(R, 1)
    beta = jnp.take(beta_table, c, axis=0).reshape(R, 1)

    # Generation-aware VMEM budget / tile target (v7x: 64 MiB per-TC VMEM).
    try:
        vmem_cap = pltpu.get_tpu_info().vmem_capacity_bytes
    except Exception:
        vmem_cap = 128 * 1024 * 1024
    small_vmem = vmem_cap <= 64 * 1024 * 1024
    vmem_limit = (32 if small_vmem else 48) * 1024 * 1024
    target_block_bytes = (6 if small_vmem else 8) * 1024 * 1024

    rows = _choose_rows_block(R, L, x.dtype.itemsize, target_block_bytes)
    grid = (pl.cdiv(R, rows),)

    kernel = functools.partial(_cin1d_kernel, eps=eps, length=L)

    out = pl.pallas_call(
        kernel,
        out_shape=jax.ShapeDtypeStruct((R, L), x.dtype),
        grid_spec=pltpu.PrefetchScalarGridSpec(
            num_scalar_prefetch=0,
            grid=grid,
            in_specs=[
                pl.BlockSpec((rows, L), lambda i: (i, 0)),
                pl.BlockSpec((rows, 1), lambda i: (i, 0)),
                pl.BlockSpec((rows, 1), lambda i: (i, 0)),
            ],
            out_specs=pl.BlockSpec((rows, L), lambda i: (i, 0)),
        ),
        compiler_params=pltpu.CompilerParams(
            dimension_semantics=("parallel",),
            vmem_limit_bytes=vmem_limit,
        ),
    )(x_rows, gamma, beta)

    return out.reshape(N, C, L)


def _reference(x, c, gamma_table, beta_table, eps=1e-5):
    mean = jnp.mean(x, axis=2, keepdims=True)
    var = jnp.var(x, axis=2, ddof=1, keepdims=True)
    x_norm = (x - mean) / jnp.sqrt(var + eps)
    gamma = jnp.take(gamma_table, c, axis=0)[:, :, None]
    beta = jnp.take(beta_table, c, axis=0)[:, :, None]
    return gamma * x_norm + beta


if __name__ == "__main__":
    eps = 1e-5
    key = jax.random.PRNGKey(0)

    # Case 1: module-sized small shapes (L % 128 != 0 -> masked-store path,
    # single full-extent row block).
    N, C, L, IN_DIM = 2, 4, 16, 8
    k1, k2, k3, k4, key = jax.random.split(key, 5)
    x = jax.random.normal(k1, (N, C, L), dtype=jnp.float32)
    gamma_table = jax.random.normal(k2, (IN_DIM, C), dtype=jnp.float32)
    beta_table = jax.random.normal(k3, (IN_DIM, C), dtype=jnp.float32)
    c = jax.random.randint(k4, (N,), 0, IN_DIM, dtype=jnp.int32)

    out = jax.block_until_ready(
        conditional_instance_norm_1d(x, c, gamma_table, beta_table, eps))
    ref = _reference(x, c, gamma_table, beta_table, eps)
    assert out.shape == (N, C, L)
    assert jnp.allclose(out, ref, atol=1e-4, rtol=1e-4), "case1 mismatch vs reference"

    # Case 2: lane-aligned L with enough rows for a multi-step row-tiled grid.
    N, C, L, IN_DIM = 4, 8, 256, 8
    k1, k2, k3, k4, key = jax.random.split(key, 5)
    x = jax.random.normal(k1, (N, C, L), dtype=jnp.float32)
    gamma_table = jax.random.normal(k2, (IN_DIM, C), dtype=jnp.float32)
    beta_table = jax.random.normal(k3, (IN_DIM, C), dtype=jnp.float32)
    c = jax.random.randint(k4, (N,), 0, IN_DIM, dtype=jnp.int32)

    out = jax.block_until_ready(
        conditional_instance_norm_1d(x, c, gamma_table, beta_table, eps))
    ref = _reference(x, c, gamma_table, beta_table, eps)
    assert out.shape == (N, C, L)
    assert jnp.allclose(out, ref, atol=1e-4, rtol=1e-4), "case2 mismatch vs reference"

    print("KERNEL_OK")
</pallas_src>

<mosaic_0001>
module attributes {stable_mosaic.version = 11 : i64} {
  func.func @_cin1d_kernel(%arg0: i32, %arg1: memref<8x16xf32, #tpu.memory_space<vmem>>, %arg2: memref<8x1xf32, #tpu.memory_space<vmem>>, %arg3: memref<8x1xf32, #tpu.memory_space<vmem>>, %arg4: memref<8x16xf32, #tpu.memory_space<vmem>>) attributes {dimension_semantics = [#tpu.dimension_semantics<parallel>], iteration_bounds = array<i64: 1>, scalar_prefetch = 0 : i64, scratch_operands = 0 : i64, tpu.core_type = #tpu.core_type<tc>, window_params = [{transform_indices = @transform_0, window_bounds = array<i64: 8, 16>}, {transform_indices = @transform_1, window_bounds = array<i64: 8, 1>}, {transform_indices = @transform_2, window_bounds = array<i64: 8, 1>}, {transform_indices = @transform_3, window_bounds = array<i64: 8, 16>}]} {
    %c0 = arith.constant 0 : index
    %c0_0 = arith.constant 0 : index
    %0 = vector.load %arg1[%c0, %c0_0] : memref<8x16xf32, #tpu.memory_space<vmem>>, vector<8x16xf32>
    %cst = arith.constant dense<0.000000e+00> : vector<8xf32>
    %1 = vector.multi_reduction <add>, %0, %cst [1] : vector<8x16xf32> to vector<8xf32>
    %2 = vector.shape_cast %1 : vector<8xf32> to vector<8x1xf32>
    %3 = arith.mulf %0, %0 : vector<8x16xf32>
    %cst_1 = arith.constant dense<0.000000e+00> : vector<8xf32>
    %4 = vector.multi_reduction <add>, %3, %cst_1 [1] : vector<8x16xf32> to vector<8xf32>
    %5 = vector.shape_cast %4 : vector<8xf32> to vector<8x1xf32>
    %cst_2 = arith.constant 6.250000e-02 : f32
    %6 = vector.broadcast %cst_2 : f32 to vector<8x1xf32>
    %7 = arith.mulf %2, %6 : vector<8x1xf32>
    %cst_3 = arith.constant 1.600000e+01 : f32
    %8 = vector.broadcast %cst_3 : f32 to vector<8x1xf32>
    %9 = arith.mulf %8, %7 : vector<8x1xf32>
    %10 = arith.mulf %9, %7 : vector<8x1xf32>
    %11 = arith.subf %5, %10 : vector<8x1xf32>
    %cst_4 = arith.constant 0.0666666701 : f32
    %12 = vector.broadcast %cst_4 : f32 to vector<8x1xf32>
    %13 = arith.mulf %11, %12 : vector<8x1xf32>
    %cst_5 = arith.constant 0.000000e+00 : f32
    %14 = vector.broadcast %cst_5 : f32 to vector<8x1xf32>
    %15 = arith.maximumf %13, %14 : vector<8x1xf32>
    %cst_6 = arith.constant 9.99999974E-6 : f32
    %16 = vector.broadcast %cst_6 : f32 to vector<8x1xf32>
    %17 = arith.addf %15, %16 : vector<8x1xf32>
    %18 = math.rsqrt %17 : vector<8x1xf32>
    %c0_7 = arith.constant 0 : index
    %c0_8 = arith.constant 0 : index
    %19 = vector.load %arg2[%c0_7, %c0_8] : memref<8x1xf32, #tpu.memory_space<vmem>>, vector<8x1xf32>
    %20 = arith.mulf %19, %18 : vector<8x1xf32>
    %c0_9 = arith.constant 0 : index
    %c0_10 = arith.constant 0 : index
    %21 = vector.load %arg3[%c0_9, %c0_10] : memref<8x1xf32, #tpu.memory_space<vmem>>, vector<8x1xf32>
    %22 = arith.mulf %7, %20 : vector<8x1xf32>
    %23 = arith.subf %21, %22 : vector<8x1xf32>
    %24 = vector.broadcast %20 : vector<8x1xf32> to vector<8x16xf32>
    %25 = arith.mulf %0, %24 : vector<8x16xf32>
    %26 = vector.broadcast %23 : vector<8x1xf32> to vector<8x16xf32>
    %27 = arith.addf %25, %26 : vector<8x16xf32>
    %c0_11 = arith.constant 0 : index
    %c0_12 = arith.constant 0 : index
    %28 = vector.load %arg4[%c0_11, %c0_12] : memref<8x16xf32, #tpu.memory_space<vmem>>, vector<8x16xf32>
    tpu.vector_store %arg4[%c0_11, %c0_12], %27 {strides = array<i32>} : memref<8x16xf32, #tpu.memory_space<vmem>>, vector<8x16xf32>,
    return
  }
  func.func @transform_0(%arg0: i32) -> (i32, i32) {
    %c0_i32 = arith.constant 0 : i32
    %c0_i32_0 = arith.constant 0 : i32
    return %arg0, %c0_i32 : i32, i32
  }
  func.func @transform_1(%arg0: i32) -> (i32, i32) {
    %c0_i32 = arith.constant 0 : i32
    %c0_i32_0 = arith.constant 0 : i32
    return %arg0, %c0_i32 : i32, i32
  }
  func.func @transform_2(%arg0: i32) -> (i32, i32) {
    %c0_i32 = arith.constant 0 : i32
    %c0_i32_0 = arith.constant 0 : i32
    return %arg0, %c0_i32 : i32, i32
  }
  func.func @transform_3(%arg0: i32) -> (i32, i32) {
    %c0_i32 = arith.constant 0 : i32
    %c0_i32_0 = arith.constant 0 : i32
    return %arg0, %c0_i32 : i32, i32
  }
}

</mosaic_0001>

<bundles_post_ra>
// kernel: tpu_custom_call.1
= control target key start
LH: loop header
LB: loop body
LE: loop exit
PB: predicated region body
PF: predicated region fallthrough
CT: control target
= control target key end

     0   :  { %vm16_vm0 = vcmask 130048   ;;  %s140_s0 = inlined_call_operand.vmem [shape: f32[8,16], index: 0, kind: input, shape index: {}]   ;;  %s141_s1 = inlined_call_operand.vmem [shape: f32[8,1], index: 1, kind: input, shape index: {}]   ;;  %s142_s2 = inlined_call_operand.vmem [shape: f32[8,1], index: 2, kind: input, shape index: {}]   ;;  %s143_s3 = inlined_call_operand.hbm [shape: f32[8,16], index: 3, kind: output, shape index: {}]  }
   0x1   :  { %v15_v0 = vld [vmem:[%s140_s0] sm:$0xff] }
   0x2   :  { %8 = vsyncpa [#allocation3], 0  ;;  %v17_v1 = vsel %vm16_vm0, %v15_v0, 0.0  ;;  %v20_v2 = vmul.f32 %v15_v0, %v15_v0  ;;  %v94_v4 = vmov 0   ;;  %v32_v14 = vld [vmem:[%s141_s1] sm:$0xff]  ;;  %s95_s17 = smov [#allocation2]  }
   0x3   :  { %18 = vadd.xlane.f32.xlu0 %v17_v1  ;;  %66 = vset.pattern.permute.xlu1 %v94_v4  ;;  %v34_v17 = vld [vmem:[%s142_s2] sm:$0xff]  ;;  %s56_s18 = sshll.u32 %s95_s17, 4  ;;  %s57_s18 = int_to_ptr.vmem [resolvable:$true] %s56_s18 }
   0x4   :  { %v21_v3 = vsel %vm16_vm0, %v20_v2, 0.0  ;;  %67 = vset.pattern.permute.xlu0 %v94_v4  ;;  %s70_s1 = scalar_lea.vmem %s57_s18, 128  ;;  %p75_p1 = scmp.lt.s32.totalorder %s57_s18, %s57_s18 }
   0x5   :  { %p71_p0 = scmp.ne.s32.totalorder %s57_s18, %s70_s1  ;;  %p76_p2 = scmp.lt.s32.totalorder %s70_s1, %s70_s1 }
   0x7   :  { %22 = vadd.xlane.f32.xlu0 %v21_v3  ;;  %p77_p3 = por %p76_p2, %p75_p1 }
   0x9   :  { %p78_p4 = pnand %p77_p3, %p71_p0 }
  0x90   :  { %v19_v5 = vpop.xlane.xlu0 %18 }
  0x91   :  { %v24_v6 = vmul.f32 0.0625, %v19_v5 }
  0x93   :  { %v25_v7 = vmul.f32 16.0, %v24_v6 }
  0x94   :  { %v23_v8 = vpop.xlane.xlu0 %22 }
  0x95   :  { %v26_v9 = vmul.f32 %v25_v7, %v24_v6 }
  0x97   :  { %v27_v10 = vsub.f32 %v23_v8, %v26_v9 }
  0x99   :  { %v28_v11 = vmul.f32 0.06666667, %v27_v10 }
  0x9b   :  { %v29_v12 = vmax.f32 %v28_v11, 0.0 }
  0x9d   :  { %v30_v13 = vadd.f32 1e-05, %v29_v12 }
  0x9f   :  { %68 = vrsqrt.f32 %v30_v13 }
  0xa9   :  { %v69_v15 = vpop.eup %68 }
  0xaa   :  { %v33_v16 = vmul.f32 %v69_v15, %v32_v14 }
  0xac   :  { %39 = vperm.xlu1 %66, %v33_v16   ;;  %v35_v18 = vmul.f32 %v33_v16, %v24_v6 }
  0xae   :  { %v36_v19 = vsub.f32 %v34_v17, %v35_v18 }
  0xb0   :  { %45 = vperm.xlu1 %66, %v36_v19  }
 0x12b   :  { %v40_v20 = vpop.permute.xlu1 %39 }
 0x12c   :  { %v42_v21 = vmul.f32 %v40_v20, %v15_v0 }
 0x12f   :  { %v46_v22 = vpop.permute.xlu1 %45 }
 0x130   :  { %v48_v23 = vadd.f32 %v46_v22, %v42_v21 }
 0x132   :  { %49 = vst.msk [vmem:[#allocation2] sm:$0xff] %vm16_vm0, %v48_v23 }
 0x133   :  { %81 = shalt.err (!%p78_p4)
}
 0x134   :  { %s82_s20 = scalar_lea.hbm %s143_s3, 128 }
 0x135   :  { %p83_p5 = scmp.ne.s32.totalorder %s143_s3, %s82_s20  ;;  %p86_p6 = scmp.lt.u32.totalorder %s82_s20, %s143_s3 }
 0x137   :  { %p88_p7 = pnand %p86_p6, %p83_p5 }
 0x139   :  { %91 = shalt.err (!%p88_p7)
}
 0x13a   :  { %59 = dma.vmem_to_hbm [thread:$0]  %s57_s18, 128, %s143_s3, [#allocation3]  }
 0x13b   :  { %92 = dma.done.wait [#allocation3], 128  }
 0x13c   :  { %93 = vsyncadd [#allocation3], 4294967168 }
 0x13d   :  { %63 = vsyncpa [#allocation3], 1 }

</bundles_post_ra>
